<compile_context>
chip_gen: v7x
topology: tpu7x:2x2x1
jax: 0.10.0
libtpu: 0.0.40
codegen_flags: <defaults>
</compile_context>

<pallas_src>
import numpy as np
import jax
import jax.numpy as jnp
from jax.experimental import pallas as pl
from jax.experimental.pallas import tpu as pltpu


# ---------------------------------------------------------------------------
# Pallas kernel: fused 3-layer MLP in batch-on-lanes layout.
# One grid step = one batch tile of TILE_B columns (lanes).
# ---------------------------------------------------------------------------
def prior_mean_kernel(xT_ref, w1t_ref, b1t_ref, w2t_ref, b2t_ref,
                      w3n_ref, b3n_ref, o_ref):
    # x tile: (D_dec, TILE_B) -- batch on the lane axis.
    xT = xT_ref[...].astype(jnp.float32)

    # layer 1 (affine transformer + env already folded into w1t/b1t)
    h1 = jnp.maximum(
        jnp.dot(w1t_ref[...], xT, preferred_element_type=jnp.float32)
        + b1t_ref[...], 0.0)                                       # (H, TB)

    # layer 2
    h2 = jnp.maximum(
        jnp.dot(w2t_ref[...], h1, preferred_element_type=jnp.float32)
        + b2t_ref[...], 0.0)                                       # (H, TB)

    # layer 3 (negation folded into w3n / b3n); result is already the
    # lane-dense (1, TILE_B) output row -> unmasked vst stores.
    o_ref[...] = (jnp.dot(w3n_ref[...], h2, preferred_element_type=jnp.float32)
                  + b3n_ref[0])                                    # (1, TB)


def _round_up(x, m):
    return ((x + m - 1) // m) * m


# ---------------------------------------------------------------------------
# Python wrapper: fold constants, transpose x to (D_dec, N), tile the batch.
# ---------------------------------------------------------------------------
def prior_mean_model_wrapper_forward(x_decision, params, env=None, *, tile_b=2048):
    scale, offset, w1d, w1e, b1, w2, b2, w3, b3 = params

    shape = x_decision.shape
    n_batch = 1
    for n in shape[:-1]:
        n_batch *= n
    d_dec = shape[-1]
    hidden = w1d.shape[-1]

    # ---- one-time constant folding (plain JAX, outside the kernel) --------
    # transformer: x*scale + offset  ->  W1_eff^T[h,d] = w1d[d,h]*scale[d]
    w1t = w1d.T * scale                                   # (H, D_dec)
    b1_eff = b1 + offset @ w1d                            # (1, H)
    if env is not None:                                   # env.repeat + concat
        b1_eff = b1_eff + env @ w1e                       # == env @ W1_env
    b1t = b1_eff.T                                        # (H, 1)
    w2t = w2.T                                            # (H, H)
    b2t = b2.T                                            # (H, 1)
    w3n = -w3.T                                           # (1, H)  negation folded
    b3n = (-b3).reshape(1)                                # (1,)    SMEM scalar

    # ---- batch-on-lanes layout: x transposed to (D_dec, N) ----------------
    if not jnp.issubdtype(x_decision.dtype, jnp.floating):
        x_decision = x_decision.astype(jnp.float32)
    xT = x_decision.reshape(n_batch, d_dec).T             # (D_dec, N) in HBM

    # ---- batch tiling: multiple of 128, no wrapper-side pad ----------------
    tb = min(_round_up(int(tile_b), 128), _round_up(n_batch, 128))
    # keep >= 2 parallel tiles when the batch allows (v7x has 2 TensorCores)
    if n_batch > 128 and pl.cdiv(n_batch, tb) < 2:
        tb = max(128, _round_up(pl.cdiv(n_batch, 2), 128))
    num_tiles = pl.cdiv(n_batch, tb)

    const2 = lambda i: (0, 0)   # weights / biases: single resident block

    out = pl.pallas_call(
        prior_mean_kernel,
        out_shape=jax.ShapeDtypeStruct((1, n_batch), jnp.float32),
        grid=(num_tiles,),
        in_specs=[
            pl.BlockSpec((d_dec, tb), lambda i: (0, i)),             # xT (batch on lanes)
            pl.BlockSpec((hidden, d_dec), const2),                   # W1_eff^T
            pl.BlockSpec((hidden, 1), const2),                       # b1_eff^T
            pl.BlockSpec((hidden, hidden), const2),                  # W2^T
            pl.BlockSpec((hidden, 1), const2),                       # b2^T
            pl.BlockSpec((1, hidden), const2),                       # -W3^T (row)
            pl.BlockSpec(memory_space=pltpu.MemorySpace.SMEM),       # -b3 (scalar)
        ],
        out_specs=pl.BlockSpec((1, tb), lambda i: (0, i)),           # lane-dense rows
        compiler_params=pltpu.CompilerParams(
            dimension_semantics=("parallel",)),
    )(xT, w1t, b1t, w2t, b2t, w3n, b3n)

    return out.reshape(shape[:-1])


# ---------------------------------------------------------------------------
# Deterministic parameter construction (synthetic weights, no checkpoint).
# ---------------------------------------------------------------------------
def make_params(key, d_dec, d_env, hidden):
    ks = jax.random.split(key, 9)
    scale  = 1.0 + 0.1 * jax.random.normal(ks[0], (1, d_dec), jnp.float32)
    offset = 0.05 * jax.random.normal(ks[1], (1, d_dec), jnp.float32)
    w1d = jax.random.normal(ks[2], (d_dec, hidden), jnp.float32) / np.sqrt(d_dec + d_env)
    w1e = jax.random.normal(ks[3], (d_env, hidden), jnp.float32) / np.sqrt(d_dec + d_env)
    b1  = 0.01 * jax.random.normal(ks[4], (1, hidden), jnp.float32)
    w2  = jax.random.normal(ks[5], (hidden, hidden), jnp.float32) / np.sqrt(hidden)
    b2  = 0.01 * jax.random.normal(ks[6], (1, hidden), jnp.float32)
    w3  = jax.random.normal(ks[7], (hidden, 1), jnp.float32) / np.sqrt(hidden)
    b3  = 0.01 * jax.random.normal(ks[8], (1, 1), jnp.float32)
    return (scale, offset, w1d, w1e, b1, w2, b2, w3, b3)


def reference_forward(x_decision, params, env):
    """Pure-JAX reference mirroring the (un-fused) PyTorch wrapper semantics."""
    scale, offset, w1d, w1e, b1, w2, b2, w3, b3 = params
    shape = x_decision.shape
    n_batch = int(np.prod(shape[:-1])) if len(shape) > 1 else 1
    x2d = x_decision.reshape(n_batch, shape[-1]).astype(jnp.float32)
    xt = x2d * scale + offset
    h1 = xt @ w1d + b1
    if env is not None:
        x_env = jnp.tile(env, (n_batch, 1))               # env.repeat(n_batch, 1)
        h1 = h1 + x_env @ w1e                             # concat-equivalent
    h1 = jnp.maximum(h1, 0.0)
    h2 = jnp.maximum(h1 @ w2 + b2, 0.0)
    y = h2 @ w3 + b3
    return (-y).reshape(shape[:-1])


if __name__ == "__main__":
    key = jax.random.PRNGKey(0)
    k_x, k_x2, k_x3, k_env, k_p = jax.random.split(key, 5)

    D_DEC, D_ENV, HIDDEN = 8, 4, 32
    params = make_params(k_p, D_DEC, D_ENV, HIDDEN)
    env = jax.random.normal(k_env, (1, D_ENV), jnp.float32)   # environmental params

    # case 1: x_decision (2, 8, 8) -> n_batch = 16 (single partial tile), env given
    x1 = jax.random.normal(k_x, (2, 8, D_DEC), jnp.float32)
    out1 = jax.block_until_ready(prior_mean_model_wrapper_forward(x1, params, env))
    ref1 = reference_forward(x1, params, env)
    np.testing.assert_allclose(np.asarray(out1), np.asarray(ref1), rtol=1e-4, atol=1e-5)
    assert out1.shape == x1.shape[:-1]

    # case 2: n_batch = 15 (ragged, not lane-aligned) and the env is None branch
    x2 = jax.random.normal(k_x2, (3, 5, D_DEC), jnp.float32)
    out2 = jax.block_until_ready(prior_mean_model_wrapper_forward(x2, params, env=None))
    ref2 = reference_forward(x2, params, env=None)
    np.testing.assert_allclose(np.asarray(out2), np.asarray(ref2), rtol=1e-4, atol=1e-5)
    assert out2.shape == x2.shape[:-1]

    # case 3: n_batch = 320 -> two parallel batch tiles (v7x megacore split) with a
    # ragged last tile on the multi-tile path.
    x3 = jax.random.normal(k_x3, (4, 80, D_DEC), jnp.float32)
    out3 = jax.block_until_ready(prior_mean_model_wrapper_forward(x3, params, env))
    ref3 = reference_forward(x3, params, env)
    np.testing.assert_allclose(np.asarray(out3), np.asarray(ref3), rtol=1e-4, atol=1e-5)
    assert out3.shape == x3.shape[:-1]

    print("KERNEL_OK")
</pallas_src>

<mosaic_0001>
module attributes {stable_mosaic.version = 11 : i64} {
  func.func @prior_mean_kernel(%arg0: i32, %arg1: memref<8x128xf32, #tpu.memory_space<vmem>>, %arg2: memref<32x8xf32, #tpu.memory_space<vmem>>, %arg3: memref<32x1xf32, #tpu.memory_space<vmem>>, %arg4: memref<32x32xf32, #tpu.memory_space<vmem>>, %arg5: memref<32x1xf32, #tpu.memory_space<vmem>>, %arg6: memref<1x32xf32, #tpu.memory_space<vmem>>, %arg7: memref<1xf32, #tpu.memory_space<smem>>, %arg8: memref<1x128xf32, #tpu.memory_space<vmem>>) attributes {dimension_semantics = [#tpu.dimension_semantics<parallel>], iteration_bounds = array<i64: 1>, scalar_prefetch = 0 : i64, scratch_operands = 0 : i64, tpu.core_type = #tpu.core_type<tc>, window_params = [{transform_indices = @transform_0, window_bounds = array<i64: 8, 128>}, {pipeline_mode = #tpu.pipeline_mode<synchronous>, transform_indices = @transform_1, window_bounds = array<i64: 32, 8>}, {pipeline_mode = #tpu.pipeline_mode<synchronous>, transform_indices = @transform_2, window_bounds = array<i64: 32, 1>}, {pipeline_mode = #tpu.pipeline_mode<synchronous>, transform_indices = @transform_3, window_bounds = array<i64: 32, 32>}, {pipeline_mode = #tpu.pipeline_mode<synchronous>, transform_indices = @transform_4, window_bounds = array<i64: 32, 1>}, {pipeline_mode = #tpu.pipeline_mode<synchronous>, transform_indices = @transform_5, window_bounds = array<i64: 1, 32>}, {transform_indices = @transform_6, window_bounds = array<i64: 1>}, {transform_indices = @transform_7, window_bounds = array<i64: 1, 128>}]} {
    %c0 = arith.constant 0 : index
    %c0_0 = arith.constant 0 : index
    %0 = vector.load %arg1[%c0, %c0_0] : memref<8x128xf32, #tpu.memory_space<vmem>>, vector<8x128xf32>
    %c0_1 = arith.constant 0 : index
    %c0_2 = arith.constant 0 : index
    %1 = vector.load %arg2[%c0_1, %c0_2] : memref<32x8xf32, #tpu.memory_space<vmem>>, vector<32x8xf32>
    %cst = arith.constant dense<0.000000e+00> : vector<32x128xf32>
    %2 = tpu.matmul %1, %0, %cst {dimension_numbers = #tpu.dot_dimension_numbers<[1], [0], [0], [1], [0, 0, 1, 1], [], []>} : vector<32x8xf32>, vector<8x128xf32>, vector<32x128xf32> -> vector<32x128xf32>
    %c0_3 = arith.constant 0 : index
    %c0_4 = arith.constant 0 : index
    %3 = vector.load %arg3[%c0_3, %c0_4] : memref<32x1xf32, #tpu.memory_space<vmem>>, vector<32x1xf32>
    %4 = vector.broadcast %3 : vector<32x1xf32> to vector<32x128xf32>
    %5 = arith.addf %2, %4 : vector<32x128xf32>
    %cst_5 = arith.constant 0.000000e+00 : f32
    %6 = vector.broadcast %cst_5 : f32 to vector<32x128xf32>
    %7 = arith.maximumf %5, %6 : vector<32x128xf32>
    %c0_6 = arith.constant 0 : index
    %c0_7 = arith.constant 0 : index
    %8 = vector.load %arg4[%c0_6, %c0_7] : memref<32x32xf32, #tpu.memory_space<vmem>>, vector<32x32xf32>
    %cst_8 = arith.constant dense<0.000000e+00> : vector<32x128xf32>
    %9 = tpu.matmul %8, %7, %cst_8 {dimension_numbers = #tpu.dot_dimension_numbers<[1], [0], [0], [1], [0, 0, 1, 1], [], []>} : vector<32x32xf32>, vector<32x128xf32>, vector<32x128xf32> -> vector<32x128xf32>
    %c0_9 = arith.constant 0 : index
    %c0_10 = arith.constant 0 : index
    %10 = vector.load %arg5[%c0_9, %c0_10] : memref<32x1xf32, #tpu.memory_space<vmem>>, vector<32x1xf32>
    %11 = vector.broadcast %10 : vector<32x1xf32> to vector<32x128xf32>
    %12 = arith.addf %9, %11 : vector<32x128xf32>
    %cst_11 = arith.constant 0.000000e+00 : f32
    %13 = vector.broadcast %cst_11 : f32 to vector<32x128xf32>
    %14 = arith.maximumf %12, %13 : vector<32x128xf32>
    %c0_12 = arith.constant 0 : index
    %c0_13 = arith.constant 0 : index
    %15 = vector.load %arg6[%c0_12, %c0_13] : memref<1x32xf32, #tpu.memory_space<vmem>>, vector<1x32xf32>
    %cst_14 = arith.constant dense<0.000000e+00> : vector<1x128xf32>
    %16 = tpu.matmul %15, %14, %cst_14 {dimension_numbers = #tpu.dot_dimension_numbers<[1], [0], [0], [1], [0, 0, 1, 1], [], []>} : vector<1x32xf32>, vector<32x128xf32>, vector<1x128xf32> -> vector<1x128xf32>
    %c0_15 = arith.constant 0 : index
    %17 = memref.load %arg7[%c0_15] : memref<1xf32, #tpu.memory_space<smem>>
    %18 = vector.broadcast %17 : f32 to vector<1x128xf32>
    %19 = arith.addf %16, %18 : vector<1x128xf32>
    %c0_16 = arith.constant 0 : index
    %c0_17 = arith.constant 0 : index
    %20 = vector.load %arg8[%c0_16, %c0_17] : memref<1x128xf32, #tpu.memory_space<vmem>>, vector<1x128xf32>
    tpu.vector_store %arg8[%c0_16, %c0_17], %19 {strides = array<i32>} : memref<1x128xf32, #tpu.memory_space<vmem>>, vector<1x128xf32>,
    return
  }
  func.func @transform_0(%arg0: i32) -> (i32, i32) {
    %c0_i32 = arith.constant 0 : i32
    %c0_i32_0 = arith.constant 0 : i32
    return %c0_i32, %arg0 : i32, i32
  }
  func.func @transform_1(%arg0: i32) -> (i32, i32) {
    %c0_i32 = arith.constant 0 : i32
    %c0_i32_0 = arith.constant 0 : i32
    %c0_i32_1 = arith.constant 0 : i32
    return %c0_i32, %c0_i32_0 : i32, i32
  }
  func.func @transform_2(%arg0: i32) -> (i32, i32) {
    %c0_i32 = arith.constant 0 : i32
    %c0_i32_0 = arith.constant 0 : i32
    %c0_i32_1 = arith.constant 0 : i32
    return %c0_i32, %c0_i32_0 : i32, i32
  }
  func.func @transform_3(%arg0: i32) -> (i32, i32) {
    %c0_i32 = arith.constant 0 : i32
    %c0_i32_0 = arith.constant 0 : i32
    %c0_i32_1 = arith.constant 0 : i32
    return %c0_i32, %c0_i32_0 : i32, i32
  }
  func.func @transform_4(%arg0: i32) -> (i32, i32) {
    %c0_i32 = arith.constant 0 : i32
    %c0_i32_0 = arith.constant 0 : i32
    %c0_i32_1 = arith.constant 0 : i32
    return %c0_i32, %c0_i32_0 : i32, i32
  }
  func.func @transform_5(%arg0: i32) -> (i32, i32) {
    %c0_i32 = arith.constant 0 : i32
    %c0_i32_0 = arith.constant 0 : i32
    %c0_i32_1 = arith.constant 0 : i32
    return %c0_i32, %c0_i32_0 : i32, i32
  }
  func.func @transform_6(%arg0: i32) -> i32 {
    %c0_i32 = arith.constant 0 : i32
    %c0_i32_0 = arith.constant 0 : i32
    return %c0_i32 : i32
  }
  func.func @transform_7(%arg0: i32) -> (i32, i32) {
    %c0_i32 = arith.constant 0 : i32
    %c0_i32_0 = arith.constant 0 : i32
    return %c0_i32, %arg0 : i32, i32
  }
}

</mosaic_0001>

<bundles_post_ra>
// kernel: tpu_custom_call.1
= control target key start
LH: loop header
LB: loop body
LE: loop exit
PB: predicated region body
PF: predicated region fallthrough
CT: control target
= control target key end

     0   :  { %vm57_vm0 = vcmask 64512   ;;  %v485_v5 = vmov 0   ;;  %s608_s0 = inlined_call_operand.vmem [shape: f32[8,16], index: 0, kind: input, shape index: {}]   ;;  %s609_s1 = inlined_call_operand.vmem [shape: f32[32,8], index: 1, kind: input, shape index: {}]   ;;  %s610_s2 = inlined_call_operand.vmem [shape: f32[32,1], index: 2, kind: input, shape index: {}]   ;;  %s611_s3 = inlined_call_operand.vmem [shape: f32[32,32], index: 3, kind: input, shape index: {}]   ;;  %s612_s4 = inlined_call_operand.vmem [shape: f32[32,1], index: 4, kind: input, shape index: {}]   ;;  %s613_s5 = inlined_call_operand.vmem [shape: f32[1,32], index: 5, kind: input, shape index: {}]   ;;  %s614_s6 = inlined_call_operand.<no memory space> [shape: f32[1], index: 6, kind: input, shape index: {}]   ;;  %s615_s7 = inlined_call_operand.hbm [shape: f32[1,16], index: 7, kind: output, shape index: {}]  }
   0x1   :  { %v28_v0 = vld [vmem:[%s608_s0] sm:$0xff]  ;;  %v30_v2 = vld [vmem:[%s609_s1 + $0x8] sm:$0xff]  ;;  %v31_v3 = vld [vmem:[%s609_s1 + $0x10] sm:$0xff]  ;;  %459 = vset.pattern.permute.xlu0 %v485_v5  ;;  %460 = vset.pattern.permute.xlu1 %v485_v5 }
   0x2   :  { %v29_v1 = vld [vmem:[%s609_s1] sm:$0xff]  ;;  %407 = vmatprep.subr.mxu0 %v28_v0  ;;  %v35_v6 = vld [vmem:[%s610_s2 + $0x10] sm:$0xff]  ;;  %v32_v7 = vld [vmem:[%s609_s1 + $0x18] sm:$0xff] }
   0x3   :  { %409 = vmatprep.mubr.msk.f32.mxu0 %vm57_vm0, %v29_v1  ;;  %v33_v4 = vld [vmem:[%s610_s2] sm:$0xff]  ;;  %408 = vmatpush3.msra.mxu0 %v28_v0  ;;  %v34_v8 = vld [vmem:[%s610_s2 + $0x8] sm:$0xff] }
   0x4   :  { %410 = vmatmul.mubr.msk.f32.vlgmr.msra.gmra.mrb[0].mxu0 %vm57_vm0, %v30_v2  ;;  %39 = vperm.xlu0 %459, %v33_v4  }
   0x5   :  { %412 = vmatprep.mubr.msk.f32.mxu0 %vm57_vm0, %v31_v3 }
   0x6   :  { %13 = vsyncpa [#allocation4], 0  ;;  %49 = vperm.xlu1 %460, %v35_v6   ;;  %v36_v9 = vld [vmem:[%s610_s2 + $0x18] sm:$0xff]  ;;  %v163_v10 = vld [vmem:[%s612_s4] sm:$0xff]  ;;  %vm187_vm1 = vcmask 261120   ;;  %v486_v36 = vmov 0.0|0.0   ;;  %v291_v57 = vstv %s614_s6 }
   0x7   :  { %v164_v11 = vld [vmem:[%s612_s4 + $0x8] sm:$0xff]  ;;  %v165_v12 = vld [vmem:[%s612_s4 + $0x10] sm:$0xff]  ;;  %v166_v13 = vld [vmem:[%s612_s4 + $0x18] sm:$0xff]  ;;  %448 = vmatprep.subr.bf16.mxu0 %v486_v36  ;;  %vm487_vm2 = vmmov 0   ;;  %v488_v37 = vmov 0.0   ;;  %s489_s0 = smov [#allocation3]  }
   0x8   :  { %413 = vmatmul.mubr.msk.f32.gmra.mrb[2].mxu0 %vm57_vm0, %v32_v7  ;;  %44 = vperm.xlu0 %459, %v34_v8   ;;  %v159_v14 = vld [vmem:[%s611_s3] sm:$0xff]  ;;  %v160_v33 = vld [vmem:[%s611_s3 + $0x8] sm:$0xff]  ;;  %v161_v34 = vld [vmem:[%s611_s3 + $0x10] sm:$0xff]  ;;  %s372_s11 = sshll.u32 %s489_s0, 4  ;;  %s373_s11 = int_to_ptr.vmem [resolvable:$true] %s372_s11 }
   0x9   :  { %423 = vmatprep.mubr.msk.f32.mxu1 %vm187_vm1, %v159_v14  ;;  %v162_v35 = vld [vmem:[%s611_s3 + $0x18] sm:$0xff]  ;;  %437 = vmatprep.mubr.msk.f32.mxu0 %vm487_vm2, %v488_v37  ;;  %v289_v56 = vld [vmem:[%s613_s5] sm:$0x1]  ;;  %s461_s12 = scalar_lea.vmem %s373_s11, 16  ;;  %s465_s13 = scalar_lea.vmem %s373_s11, 32 }
   0xa   :  { %54 = vperm.xlu1 %460, %v36_v9   ;;  %p462_p0 = scmp.ne.s32.totalorder %s373_s11, %s461_s12  ;;  %p466_p1 = scmp.lt.s32.totalorder %s373_s11, %s373_s11 }
   0xb   :  { %p467_p2 = scmp.lt.s32.totalorder %s465_s13, %s461_s12 }
   0xc   :  { %169 = vperm.xlu0 %459, %v163_v10  }
   0xd   :  { %p468_p3 = por %p467_p2, %p466_p1 }
   0xe   :  { %174 = vperm.xlu1 %460, %v164_v11  }
   0xf   :  { %p469_p4 = pnand %p468_p3, %p462_p0 }
  0x10   :  { %179 = vperm.xlu0 %459, %v165_v12  }
  0x12   :  { %184 = vperm.xlu1 %460, %v166_v13  }
  0x83   :  { %v40_v15 = vpop.permute.xlu0 %39 }
  0x85   :  { %v50_v16 = vpop.permute.xlu1 %49 }
  0x87   :  { %v45_v17 = vpop.permute.xlu0 %44 }
  0x89   :  { %v55_v23 = vpop.permute.xlu1 %54 }
  0x8b   :  { %v170_v39 = vpop.permute.xlu0 %169 }
  0x8d   :  { %v175_v38 = vpop.permute.xlu1 %174 }
  0x8f   :  { %v180_v48 = vpop.permute.xlu0 %179 }
  0x91   :  { %v185_v45 = vpop.permute.xlu1 %184 }
  0xd7   :  { %v411_v18 = vpop.f32.mrb[0].mxu0 }
  0xd8   :  { %v142_v19 = vadd.f32 %v411_v18, %v45_v17  ;;  %v136_v20 = vpop.f32.mrb[1].mxu0 }
  0xd9   :  { %v137_v21 = vadd.f32 %v136_v20, %v40_v15 }
  0xda   :  { %v156_v22 = vmax.f32 %v142_v19, 0.0 }
  0xdb   :  { %v155_v24 = vmax.f32 %v137_v21, 0.0  ;;  %v414_v25 = vpop.f32.mrb[2].mxu0 }
  0xdc   :  { %v152_v26 = vadd.f32 %v414_v25, %v55_v23  ;;  %v146_v27 = vpop.f32.mrb[3].mxu0 }
  0xdd   :  { %v147_v28 = vadd.f32 %v146_v27, %v50_v16  ;;  %v440_v29 = vpack.c.bf16 %v156_v22, %v155_v24 }
  0xde   :  { %v158_v30 = vmax.f32 %v152_v26, 0.0 }
  0xdf   :  { %v157_v31 = vmax.f32 %v147_v28, 0.0  ;;  %441 = vmatprep.subr.bf16.mxu1 %v440_v29 }
  0xe0   :  { %443 = vmatpush3.bf16.msra.mxu1 %v440_v29 }
  0xe1   :  { %v444_v32 = vpack.c.bf16 %v158_v30, %v157_v31 }
  0xe3   :  { %445 = vmatprep.subr.bf16.mxu1 %v444_v32 }
  0xe4   :  { %447 = vmatpush3.bf16.msra.mxu1 %v444_v32 }
  0xe7   :  { %424 = vmatmul.mubr.msk.f32.vlgmr.msra.gmra.mrb[0].mxu1 %vm187_vm1, %v160_v33 }
  0xe8   :  { %426 = vmatprep.mubr.msk.f32.mxu1 %vm187_vm1, %v161_v34 }
  0xeb   :  { %427 = vmatmul.mubr.msk.f32.gmra.mrb[2].mxu1 %vm187_vm1, %v162_v35 }
 0x1ba   :  { %v425_v40 = vpop.f32.mrb[0].mxu1 }
 0x1bb   :  { %v272_v41 = vadd.f32 %v425_v40, %v175_v38  ;;  %v266_v42 = vpop.f32.mrb[1].mxu1 }
 0x1bc   :  { %v267_v43 = vadd.f32 %v266_v42, %v170_v39 }
 0x1bd   :  { %v286_v44 = vmax.f32 %v272_v41, 0.0 }
 0x1be   :  { %v285_v46 = vmax.f32 %v267_v43, 0.0  ;;  %v428_v47 = vpop.f32.mrb[2].mxu1 }
 0x1bf   :  { %v282_v49 = vadd.f32 %v428_v47, %v185_v45  ;;  %v276_v50 = vpop.f32.mrb[3].mxu1 }
 0x1c0   :  { %v449_v51 = vpack.c.bf16 %v286_v44, %v285_v46  ;;  %v277_v52 = vadd.f32 %v276_v50, %v180_v48 }
 0x1c1   :  { %v288_v53 = vmax.f32 %v282_v49, 0.0 }
 0x1c2   :  { %v287_v54 = vmax.f32 %v277_v52, 0.0  ;;  %450 = vmatpush3.bf16.msra.mxu0 %v449_v51 }
 0x1c3   :  { %451 = vmatprep.subr.bf16.mxu0 %v486_v36 }
 0x1c4   :  { %v452_v55 = vpack.c.bf16 %v288_v53, %v287_v54 }
 0x1c6   :  { %453 = vmatpush3.bf16.msra.mxu0 %v452_v55 }
 0x1c9   :  { %438 = vmatmul.mubr.msk.f32.vlgmr.msra.gmra.mrb[4].mxu0 %vm187_vm1, %v289_v56 }
 0x29c   :  { %v361_v58 = vpop.f32.mrb[4].mxu0 }
 0x29d   :  { %v362_v59 = vadd.f32 %v361_v58, %v291_v57  ;;  %v439_v60 = vpop.f32.mrb[5].mxu0 }
 0x29f   :  { %365 = vst [vmem:[#allocation3] sm:$0x1] %v362_v59 }
 0x2a0   :  { %472 = shalt.err (!%p469_p4)
}
 0x2a1   :  { %s473_s15 = scalar_lea.hbm %s615_s7, 16 }
 0x2a2   :  { %p474_p5 = scmp.ne.s32.totalorder %s615_s7, %s473_s15  ;;  %p477_p6 = scmp.lt.u32.totalorder %s473_s15, %s615_s7 }
 0x2a4   :  { %p479_p7 = pnand %p477_p6, %p474_p5 }
 0x2a6   :  { %482 = shalt.err (!%p479_p7)
}
 0x2a7   :  { %375 = dma.vmem_to_hbm [thread:$0]  %s373_s11, 16, %s615_s7, [#allocation4]  }
 0x2a8   :  { %483 = dma.done.wait [#allocation4], 16  }
 0x2a9   :  { %484 = vsyncadd [#allocation4], 4294967280 }
 0x2aa   :  { %379 = vsyncpa [#allocation4], 1 }

</bundles_post_ra>
